<compile_context>
chip_gen: v5e
topology: v5e:2x2
jax: 0.10.0
libtpu: 0.0.40
codegen_flags: <defaults>
</compile_context>

<pallas_src>
import functools
import math

import jax
import jax.numpy as jnp
from jax.experimental import pallas as pl
from jax.experimental.pallas import tpu as pltpu

_LANES = 128
_TWO_PI = jnp.float32(2.0 * math.pi)


def _round_up(a: int, b: int) -> int:
    return -(-a // b) * b


def _gaussian_noise_tpu_kernel(seed_ref, x_ref, o_ref, *, std, half_rows):
    """o = x + N(0, std^2) on a (2*half_rows, 128) tile, noise generated on-chip."""
    # Independent stream per grid step (prng_seed hashes all scalar seeds), so
    # the grid axis can run "parallel" (both TensorCores on v7x) without
    # correlated tiles.
    pltpu.prng_seed(seed_ref[0], pl.program_id(0))

    # One PRNG dispatch per tile; the two halves feed one Box-Muller pair each.
    # The bitcast is a zero-cost reinterpretation that guarantees a *logical*
    # right shift below regardless of the dtype prng_random_bits reports.
    bits = pltpu.bitcast(
        pltpu.prng_random_bits((2 * half_rows, _LANES)), jnp.uint32
    )
    bits1 = bits[:half_rows]
    bits2 = bits[half_rows:]

    # Exponent bit-trick: (bits >> 9) | 0x3F800000 reinterpreted as f32 is in
    # [1, 2).  u1 = 2 - f1 lies in (0, 1] (log(u1) finite); u2 = f2 - 1 lies in
    # [0, 1).  Uniforms carry 23 mantissa bits -- fine for augmentation noise.
    one = jnp.uint32(0x3F800000)
    u1 = 2.0 - pltpu.bitcast((bits1 >> 9) | one, jnp.float32)
    u2 = pltpu.bitcast((bits2 >> 9) | one, jnp.float32) - 1.0

    # Box-Muller.  std is folded into r: one extra multiply per *pair*.
    r = jnp.sqrt(jnp.float32(-2.0) * jnp.log(u1)) * jnp.float32(std)
    theta = _TWO_PI * u2
    c = jnp.cos(theta)
    # Second normal: sign * sqrt(1 - c^2) instead of sin(theta).  The sign bit
    # comes from bit 8 of bits2 (unused by the >> 9 above, hence independent of
    # theta) and is XORed into the f32 sign bit -- no select needed.
    s_abs = jnp.sqrt(jnp.maximum(1.0 - c * c, jnp.float32(0.0)))
    sign_bits = (bits2 & jnp.uint32(0x100)) << 23  # bit 8 -> bit 31
    s = pltpu.bitcast(pltpu.bitcast(s_abs, jnp.uint32) ^ sign_bits, jnp.float32)

    # Write the two halves straight into the output tile (no concatenate temp).
    x_lo = x_ref[pl.ds(0, half_rows), :].astype(jnp.float32)
    x_hi = x_ref[pl.ds(half_rows, half_rows), :].astype(jnp.float32)
    o_ref[pl.ds(0, half_rows), :] = (x_lo + r * c).astype(o_ref.dtype)
    o_ref[pl.ds(half_rows, half_rows), :] = (x_hi + r * s).astype(o_ref.dtype)


def _add_noise_fallback_kernel(x_ref, n_ref, o_ref, *, std):
    # Portable path (interpret / non-TPU backends): noise comes in as an input.
    x = x_ref[...].astype(jnp.float32)
    n = n_ref[...].astype(jnp.float32)
    o_ref[...] = (x + n * jnp.float32(std)).astype(o_ref.dtype)


def add_gaussian_noise(x, seed, std=1.0, tile_rows=2048):
    """Returns x + N(0, std^2) noise, same shape/dtype as x (any shape)."""
    orig_shape = x.shape
    total = x.size
    if total == 0:
        return x

    # Lane-dense (rows, 128) slab.  Pad only when forced to (total not a
    # multiple of 128, or a tiny input below one minimal tile); typical NCHW
    # tensors take the copy-free path both in and out.
    rows = -(-total // _LANES)
    slab_rows = max(rows, 16)          # tiny inputs: one minimal 16-row tile
    slab_total = slab_rows * _LANES

    flat = x.reshape(-1)
    if slab_total != total:
        flat = jnp.pad(flat, (0, slab_total - total))
    x2 = flat.reshape(slab_rows, _LANES)

    # Tile rows: multiple of 16 (32 when possible) so the Box-Muller half
    # boundary stays sublane-aligned (incl. packed bf16); capped at 4096 rows
    # (2 MiB f32/tile) so in/out double-buffers plus the half-tile f32 temps
    # stay well inside v7x's 32 MiB scoped VMEM; clamped so mid-size inputs
    # still get >= 2-4 grid steps (v7x megacore + pipeline overlap).
    tr = min(int(tile_rows), 4096, slab_rows)
    if slab_rows >= 64:
        steps = min(4, slab_rows // 32)
        tr = min(tr, _round_up(-(-slab_rows // steps), 32))
    tr = max(16, (tr // 16) * 16)
    if tr >= 32:
        tr = (tr // 32) * 32

    grid = (pl.cdiv(slab_rows, tr),)   # last tile may be ragged; Pallas masks it
    tile_shape = (tr, _LANES)
    out_shape = jax.ShapeDtypeStruct((slab_rows, _LANES), x.dtype)

    if jax.default_backend() == "tpu":
        kernel = functools.partial(
            _gaussian_noise_tpu_kernel, std=float(std), half_rows=tr // 2
        )
        seed_arr = jnp.asarray([seed], dtype=jnp.int32)
        # Footprint: double-buffered in + out tiles (4 * tile_bytes) plus
        # ~6 half-tile f32 Box-Muller temps (~3 * tile_bytes f32) -> <= ~22 MiB
        # at the 4096-row cap.  A flat 32 MiB limit is safe on every chip
        # (raises v5e's 16 MiB scoped default, no-op on v6e/v7x).
        compiler_params = pltpu.CompilerParams(
            dimension_semantics=("parallel",),
            vmem_limit_bytes=32 << 20,
        )
        out2 = pl.pallas_call(
            kernel,
            out_shape=out_shape,
            grid_spec=pltpu.PrefetchScalarGridSpec(
                num_scalar_prefetch=1,
                grid=grid,
                in_specs=[pl.BlockSpec(tile_shape, lambda i, seed_ref: (i, 0))],
                out_specs=pl.BlockSpec(tile_shape, lambda i, seed_ref: (i, 0)),
            ),
            compiler_params=compiler_params,
            # x2 aliases the output slab (index counts the scalar-prefetch arg),
            # avoiding a second full-size HBM allocation.
            input_output_aliases={1: 0},
        )(seed_arr, x2)
    else:
        # Non-TPU backend (e.g. interpret on CPU): the TPU hardware PRNG has no
        # lowering there, so draw the noise with jax.random outside the kernel
        # and fuse the scale+add inside it.
        noise2 = jax.random.normal(
            jax.random.PRNGKey(seed), (slab_rows, _LANES), dtype=jnp.float32
        )
        out2 = pl.pallas_call(
            functools.partial(_add_noise_fallback_kernel, std=float(std)),
            out_shape=out_shape,
            grid=grid,
            in_specs=[
                pl.BlockSpec(tile_shape, lambda i: (i, 0)),
                pl.BlockSpec(tile_shape, lambda i: (i, 0)),
            ],
            out_specs=pl.BlockSpec(tile_shape, lambda i: (i, 0)),
        )(x2, noise2)

    if slab_total != total:
        return out2.reshape(-1)[:total].reshape(orig_shape)
    return out2.reshape(orig_shape)


if __name__ == "__main__":
    key = jax.random.PRNGKey(0)
    # NCHW input, matching the PyTorch convention.
    x = jax.random.normal(key, (2, 4, 16, 16), dtype=jnp.float32)

    std = 1.0
    y = add_gaussian_noise(x, seed=0, std=std)
    y = jax.block_until_ready(y)

    # Sanity checks: shape/dtype preserved, noise statistics roughly N(0, std^2).
    assert y.shape == x.shape and y.dtype == x.dtype
    noise = y - x
    mean = float(jnp.mean(noise))
    var = float(jnp.var(noise))
    assert abs(mean) < 0.25, f"noise mean too far from 0: {mean}"
    assert abs(var - std**2) < 0.35, f"noise var too far from {std**2}: {var}"

    print("KERNEL_OK")
</pallas_src>

<mosaic_0001>
module attributes {stable_mosaic.version = 11 : i64} {
  func.func @_add_noise_fallback_kernel(%arg0: i32, %arg1: memref<16x128xf32, #tpu.memory_space<vmem>>, %arg2: memref<16x128xf32, #tpu.memory_space<vmem>>, %arg3: memref<16x128xf32, #tpu.memory_space<vmem>>) attributes {dimension_semantics = [#tpu.dimension_semantics<arbitrary>], iteration_bounds = array<i64: 1>, scalar_prefetch = 0 : i64, scratch_operands = 0 : i64, tpu.core_type = #tpu.core_type<tc>, window_params = [{transform_indices = @transform_0, window_bounds = array<i64: 16, 128>}, {transform_indices = @transform_1, window_bounds = array<i64: 16, 128>}, {transform_indices = @transform_2, window_bounds = array<i64: 16, 128>}]} {
    %c0 = arith.constant 0 : index
    %c0_0 = arith.constant 0 : index
    %0 = vector.load %arg1[%c0, %c0_0] : memref<16x128xf32, #tpu.memory_space<vmem>>, vector<16x128xf32>
    %c0_1 = arith.constant 0 : index
    %c0_2 = arith.constant 0 : index
    %1 = vector.load %arg2[%c0_1, %c0_2] : memref<16x128xf32, #tpu.memory_space<vmem>>, vector<16x128xf32>
    %cst = arith.constant 1.000000e+00 : f32
    %2 = vector.broadcast %cst : f32 to vector<16x128xf32>
    %3 = arith.mulf %1, %2 : vector<16x128xf32>
    %4 = arith.addf %0, %3 : vector<16x128xf32>
    %c0_3 = arith.constant 0 : index
    %c0_4 = arith.constant 0 : index
    %5 = vector.load %arg3[%c0_3, %c0_4] : memref<16x128xf32, #tpu.memory_space<vmem>>, vector<16x128xf32>
    tpu.vector_store %arg3[%c0_3, %c0_4], %4 {strides = array<i32>} : memref<16x128xf32, #tpu.memory_space<vmem>>, vector<16x128xf32>,
    return
  }
  func.func @transform_0(%arg0: i32) -> (i32, i32) {
    %c0_i32 = arith.constant 0 : i32
    %c0_i32_0 = arith.constant 0 : i32
    return %arg0, %c0_i32 : i32, i32
  }
  func.func @transform_1(%arg0: i32) -> (i32, i32) {
    %c0_i32 = arith.constant 0 : i32
    %c0_i32_0 = arith.constant 0 : i32
    return %arg0, %c0_i32 : i32, i32
  }
  func.func @transform_2(%arg0: i32) -> (i32, i32) {
    %c0_i32 = arith.constant 0 : i32
    %c0_i32_0 = arith.constant 0 : i32
    return %arg0, %c0_i32 : i32, i32
  }
}

</mosaic_0001>

<bundles_post_ra>
// kernel: tpu_custom_call.1
= control target key start
LH: loop header
LB: loop body
LE: loop exit
PB: predicated region body
PF: predicated region fallthrough
CT: control target
= control target key end

     0   :  { %7 = vsyncpa [#allocation3], 0  ;;  %s184_s0 = inlined_call_operand.hbm [shape: f32[16,128], index: 0, kind: input, shape index: {}]   ;;  %s185_s1 = inlined_call_operand.hbm [shape: f32[16,128], index: 1, kind: input, shape index: {}]   ;;  %s186_s2 = inlined_call_operand.hbm [shape: f32[16,128], index: 2, kind: output, shape index: {}]  }
   0x1   :  { %8 = vsyncpa [#allocation6], 0 }
   0x2   :  { %9 = vsyncpa [#allocation4], 0  ;;  %s14_s11 = sshll.u32 %s184_s0, 4  ;;  %s155_s12 = smov [#allocation2]   ;;  %s15_s11 = int_to_ptr.hbm [resolvable:$true] %s14_s11 }
   0x3   :  { %s16_s13 = sshll.u32 %s155_s12, 4  ;;  %s27_s16 = sshll.u32 %s185_s1, 4  ;;  %s17_s13 = int_to_ptr.vmem [resolvable:$true] %s16_s13  ;;  %s28_s16 = int_to_ptr.hbm [resolvable:$true] %s27_s16 }
   0x4   :  { %s156_s17 = smov 128   ;;  %s157_s18 = smov 8  }
   0x5   :  { %22 = dma.hbm_to_vmem [thread:$0]  %s15_s11, 256, %s17_s13, [#allocation3], %s156_s17, %s156_s17, %s157_s18  }
   0x6   :  { %s158_s19 = smov [#allocation5]  }
   0x7   :  { %s29_s20 = sshll.u32 %s158_s19, 4  ;;  %s30_s20 = int_to_ptr.vmem [resolvable:$true] %s29_s20 }
   0x8   :  { %35 = dma.hbm_to_vmem [thread:$0]  %s28_s16, 256, %s30_s20, [#allocation6], %s156_s17, %s156_s17, %s157_s18  }
   0x9   :  { %149 = dma.done.wait [#allocation3], 256  }
   0xa   :  { %150 = vsyncadd [#allocation3], 4294967040 }
   0xb   :  { %151 = dma.done.wait [#allocation6], 256  }
   0xc   :  { %152 = vsyncadd [#allocation6], 4294967040  ;;  %s159_s0 = smov [#allocation7]   ;;  %s58_s24 = sshll.u32 %s186_s2, 4  ;;  %v44_v0 = vld [vmem:[#allocation2] sm:$0xff]  ;;  %v46_v1 = vld [vmem:[#allocation5] sm:$0xff]  ;;  %s59_s24 = int_to_ptr.hbm [resolvable:$true] %s58_s24 }
   0xd   :  { %s56_s21 = sshll.u32 %s159_s0, 4  ;;  %v45_v2 = vld [vmem:[#allocation2 + $0x8] sm:$0xff]  ;;  %v48_v3 = vadd.f32 %v46_v1, %v44_v0  ;;  %v47_v4 = vld [vmem:[#allocation5 + $0x8] sm:$0xff]  ;;  %s57_s21 = int_to_ptr.vmem [resolvable:$true] %s56_s21 }
   0xe   :  { %v49_v5 = vadd.f32 %v47_v4, %v45_v2 }
   0xf   :  { %50 = vst [vmem:[#allocation7] sm:$0xff] %v48_v3 }
  0x10   :  { %51 = vst [vmem:[#allocation7 + $0x8] sm:$0xff] %v49_v5 }
  0x11   :  { %64 = dma.vmem_to_hbm [thread:$0]  %s57_s21, 256, %s59_s24, [#allocation4], %s156_s17, %s156_s17, %s157_s18  }
  0x12   :  { %153 = dma.done.wait [#allocation4], 256  }
  0x13   :  { %154 = vsyncadd [#allocation4], 4294967040 }
  0x14   :  { %69 = vsyncpa [#allocation3], 1 }
  0x15   :  { %70 = vsyncpa [#allocation6], 1 }
  0x16   :  { %71 = vsyncpa [#allocation4], 1 }

</bundles_post_ra>
